<compile_context>
chip_gen: v7x
topology: tpu7x:2x2x1
jax: 0.10.0
libtpu: 0.0.40
codegen_flags: <defaults>
</compile_context>

<pallas_src>
import jax
import jax.numpy as jnp
from jax import lax
from jax.experimental import pallas as pl
from jax.experimental.pallas import tpu as pltpu


def _round_up(n, m):
    return ((n + m - 1) // m) * m


def mlp_kernel(x_ref, w1t_ref, wht_ref, wot_ref, bhid_ref, bo_ref, out_ref):
    # x_ref: (TILE_B, IN) batch-major, exactly as stored in HBM (no wrapper
    # transpose/pad). All weights are bf16, biases f32.
    x = x_ref[...].astype(jnp.float32)

    # F.normalize: L2 over the feature (lane) axis. Clamp the *squared* norm
    # at eps^2 to reproduce clamp(norm, 1e-12) semantics for zero rows.
    sumsq = jnp.sum(x * x, axis=1, keepdims=True)            # (TILE_B, 1)
    inv_norm = lax.rsqrt(jnp.maximum(sumsq, 1e-24))           # (TILE_B, 1)
    xn = (x * inv_norm).astype(jnp.bfloat16)                  # bf16 MXU operand

    hidden = wht_ref.shape[0]
    tile_b = x_ref.shape[0]

    b1 = bhid_ref[:, 0:1]                                      # (H, 1)
    # Hoisted bias broadcast (used 3x inside the unrolled loop below).
    bh_b = jnp.broadcast_to(bhid_ref[:, 1:2], (hidden, tile_b))

    def leaky_relu(h):
        return jnp.maximum(h, 0.01 * h)

    # Input layer (BatchNorm folded into w1t / b1). Contract the shared
    # feature axis: (H, IN) x (TILE_B, IN) -> (H, TILE_B); the x transpose
    # happens inside the MXU/XLU, not as an extra HBM pass.
    dn = (((1,), (1,)), ((), ()))
    h = lax.dot_general(w1t_ref[...], xn, dn,
                        preferred_element_type=jnp.float32) + b1
    h = leaky_relu(h)

    # 3 repetitions of the SAME hidden linear + (folded) BatchNorm module.
    wht = wht_ref[...]
    for _ in range(3):
        h = jnp.dot(wht, h.astype(jnp.bfloat16),
                    preferred_element_type=jnp.float32) + bh_b
        h = leaky_relu(h)

    # Output layer + softmax over the (padded) class axis. Padded classes have
    # bias -1e30 so their exp underflows to exactly 0.
    logits = jnp.dot(wot_ref[...], h.astype(jnp.bfloat16),
                     preferred_element_type=jnp.float32) + bo_ref[...]
    m = jnp.max(logits, axis=0, keepdims=True)
    e = jnp.exp(logits - m)
    denom = jnp.sum(e, axis=0, keepdims=True)                  # (1, TILE_B)
    out_ref[...] = e * (1.0 / denom)                           # exact normalize


@jax.jit
def mlp_forward(x, w1t, wht, wot, b_hidden, bo_c):
    """x: (batch, input_size). Folded params from fold_params (weights bf16)."""
    batch, in_size = x.shape
    hidden = w1t.shape[0]
    out_size = wot.shape[0]

    # Pad the class axis to a sublane multiple (e.g. 10 -> 16). Padded classes
    # get zero weights and a -1e30 bias so they contribute 0 to the softmax.
    out_pad = _round_up(out_size, 8)
    if out_pad != out_size:
        wot = jnp.pad(wot, ((0, out_pad - out_size), (0, 0)))
        bo_c = jnp.pad(bo_c, ((0, out_pad - out_size), (0, 0)),
                       constant_values=-1e30)

    # Batch tile: big enough to amortize per-step overhead (up to 8192 cols,
    # still only a few MiB of VMEM), multiple of 128 lanes. For batches >= 256
    # cap at ~half the batch so grid >= 2 and v7x's 2 TensorCores both work.
    tile_b = min(8192, _round_up(batch, 128))
    if batch >= 256:
        half = max(128, (_round_up(batch, 128) // 2) // 128 * 128)
        tile_b = min(tile_b, half)
    grid = pl.cdiv(batch, tile_b)

    out = pl.pallas_call(
        mlp_kernel,
        out_shape=jax.ShapeDtypeStruct((out_pad, batch), jnp.float32),
        grid=(grid,),
        in_specs=[
            pl.BlockSpec((tile_b, in_size), lambda i: (i, 0)),   # x, batch-major
            pl.BlockSpec((hidden, in_size), lambda i: (0, 0)),   # W1' (folded)
            pl.BlockSpec((hidden, hidden), lambda i: (0, 0)),    # Wh' (folded)
            pl.BlockSpec((out_pad, hidden), lambda i: (0, 0)),   # Wo^T (padded)
            pl.BlockSpec((hidden, 2), lambda i: (0, 0)),         # [b1'|bh']
            pl.BlockSpec((out_pad, 1), lambda i: (0, 0)),        # bo (padded)
        ],
        out_specs=pl.BlockSpec((out_pad, tile_b), lambda i: (0, i)),
        compiler_params=pltpu.CompilerParams(
            dimension_semantics=("parallel",)),
    )(x, w1t, wht, wot, b_hidden, bo_c)

    # Output is class-major; slice off padded classes and transpose (tiny).
    return out[:out_size].T                                     # (batch, out)


def fold_params(w1, b1, wh, bh, gamma, beta, mean, var, wo, bo):
    """One-time host-side fold of eval-mode BatchNorm into the linears, plus
    transpose into the feature-major layout and bf16 cast of the weights."""
    scale = gamma * lax.rsqrt(var + 1e-5)        # (1, H)
    shift = beta - mean * scale                  # (1, H)
    w1f = w1 * scale                             # (IN, H)
    b1f = b1 * scale + shift                     # (1, H)
    whf = wh * scale                             # (H, H)
    bhf = bh * scale + shift                     # (1, H)

    w1t = w1f.T.astype(jnp.bfloat16)             # (H, IN)  bf16 MXU operand
    wht = whf.T.astype(jnp.bfloat16)             # (H, H)
    wot = wo.T.astype(jnp.bfloat16)              # (OUT, H)
    b_hidden = jnp.concatenate([b1f.T, bhf.T], axis=1).astype(jnp.float32)  # (H, 2)
    bo_c = bo.T.astype(jnp.float32)              # (OUT, 1)
    return w1t, wht, wot, b_hidden, bo_c


def init_params(key, input_size, hidden, output_size):
    """Deterministic parameter init mimicking PyTorch Linear defaults."""
    def linear_init(k, fan_in, fan_out):
        bound = 1.0 / jnp.sqrt(jnp.float32(fan_in))
        k1, k2 = jax.random.split(k)
        w = jax.random.uniform(k1, (fan_in, fan_out), jnp.float32, -bound, bound)
        b = jax.random.uniform(k2, (1, fan_out), jnp.float32, -bound, bound)
        return w, b

    k1, k2, k3 = jax.random.split(key, 3)
    w1, b1 = linear_init(k1, input_size, hidden)
    wh, bh = linear_init(k2, hidden, hidden)
    wo, bo = linear_init(k3, hidden, output_size)

    # BatchNorm1d defaults: gamma=1, beta=0, running_mean=0, running_var=1
    gamma = jnp.ones((1, hidden), jnp.float32)
    beta = jnp.zeros((1, hidden), jnp.float32)
    mean = jnp.zeros((1, hidden), jnp.float32)
    var = jnp.ones((1, hidden), jnp.float32)

    return w1, b1, wh, bh, gamma, beta, mean, var, wo, bo


def mlp_reference(x, w1, b1, wh, bh, gamma, beta, mean, var, wo, bo):
    """Pure-JAX f32 reference matching the PyTorch eval-mode forward."""
    x = x.astype(jnp.float32)
    norm = jnp.sqrt(jnp.sum(x * x, axis=-1, keepdims=True))
    x = x / jnp.maximum(norm, 1e-12)

    def bn(h):
        return (h - mean) * lax.rsqrt(var + 1e-5) * gamma + beta

    def lrelu(h):
        return jnp.where(h > 0, h, 0.01 * h)

    h = lrelu(bn(x @ w1 + b1))
    for _ in range(3):
        h = lrelu(bn(h @ wh + bh))
    logits = h @ wo + bo
    return jax.nn.softmax(logits, axis=-1)


if __name__ == "__main__":
    batch, input_size, hidden, output_size = 8, 16, 32, 10

    key = jax.random.PRNGKey(0)
    kx, kp = jax.random.split(key)
    x = jax.random.normal(kx, (batch, input_size), jnp.float32)

    raw_params = init_params(kp, input_size, hidden, output_size)
    folded = fold_params(*raw_params)

    out = jax.block_until_ready(mlp_forward(x, *folded))

    assert out.shape == (batch, output_size)
    # exact softmax normalization -> rows sum to 1 (tight tolerance)
    assert jnp.allclose(jnp.sum(out, axis=-1), 1.0, atol=1e-3)

    # compare against the un-folded pure-JAX f32 reference (bf16 MXU operands)
    ref = jax.block_until_ready(mlp_reference(x, *raw_params))
    assert jnp.allclose(out, ref, atol=5e-3, rtol=5e-2), (
        "max abs err %g" % float(jnp.max(jnp.abs(out - ref))))

    print("KERNEL_OK")
</pallas_src>

<mosaic_0001>
module attributes {stable_mosaic.version = 11 : i64} {
  func.func @mlp_kernel(%arg0: i32, %arg1: memref<128x16xf32, #tpu.memory_space<vmem>>, %arg2: memref<32x16xbf16, #tpu.memory_space<vmem>>, %arg3: memref<32x32xbf16, #tpu.memory_space<vmem>>, %arg4: memref<16x32xbf16, #tpu.memory_space<vmem>>, %arg5: memref<32x2xf32, #tpu.memory_space<vmem>>, %arg6: memref<16x1xf32, #tpu.memory_space<vmem>>, %arg7: memref<16x128xf32, #tpu.memory_space<vmem>>) attributes {dimension_semantics = [#tpu.dimension_semantics<parallel>], iteration_bounds = array<i64: 1>, scalar_prefetch = 0 : i64, scratch_operands = 0 : i64, tpu.core_type = #tpu.core_type<tc>, window_params = [{transform_indices = @transform_0, window_bounds = array<i64: 128, 16>}, {pipeline_mode = #tpu.pipeline_mode<synchronous>, transform_indices = @transform_1, window_bounds = array<i64: 32, 16>}, {pipeline_mode = #tpu.pipeline_mode<synchronous>, transform_indices = @transform_2, window_bounds = array<i64: 32, 32>}, {pipeline_mode = #tpu.pipeline_mode<synchronous>, transform_indices = @transform_3, window_bounds = array<i64: 16, 32>}, {pipeline_mode = #tpu.pipeline_mode<synchronous>, transform_indices = @transform_4, window_bounds = array<i64: 32, 2>}, {pipeline_mode = #tpu.pipeline_mode<synchronous>, transform_indices = @transform_5, window_bounds = array<i64: 16, 1>}, {transform_indices = @transform_6, window_bounds = array<i64: 16, 128>}]} {
    %c0 = arith.constant 0 : index
    %c0_0 = arith.constant 0 : index
    %0 = vector.load %arg1[%c0, %c0_0] : memref<128x16xf32, #tpu.memory_space<vmem>>, vector<128x16xf32>
    %1 = arith.mulf %0, %0 : vector<128x16xf32>
    %cst = arith.constant dense<0.000000e+00> : vector<128xf32>
    %2 = vector.multi_reduction <add>, %1, %cst [1] : vector<128x16xf32> to vector<128xf32>
    %3 = vector.shape_cast %2 : vector<128xf32> to vector<128x1xf32>
    %cst_1 = arith.constant 1.000000e-24 : f32
    %4 = vector.broadcast %cst_1 : f32 to vector<128x1xf32>
    %5 = arith.maximumf %3, %4 : vector<128x1xf32>
    %6 = math.rsqrt %5 : vector<128x1xf32>
    %7 = vector.broadcast %6 : vector<128x1xf32> to vector<128x16xf32>
    %8 = arith.mulf %0, %7 : vector<128x16xf32>
    %9 = arith.truncf %8 : vector<128x16xf32> to vector<128x16xbf16>
    %c0_2 = arith.constant 0 : index
    %c0_3 = arith.constant 0 : index
    %10 = vector.load %arg5[%c0_2, %c0_3] : memref<32x2xf32, #tpu.memory_space<vmem>>, vector<32x1xf32>
    %c0_4 = arith.constant 0 : index
    %c1 = arith.constant 1 : index
    %11 = vector.load %arg5[%c0_4, %c1] : memref<32x2xf32, #tpu.memory_space<vmem>>, vector<32x1xf32>
    %12 = vector.shape_cast %11 : vector<32x1xf32> to vector<32x1xf32>
    %13 = vector.broadcast %12 : vector<32x1xf32> to vector<32x128xf32>
    %c0_5 = arith.constant 0 : index
    %c0_6 = arith.constant 0 : index
    %14 = vector.load %arg2[%c0_5, %c0_6] : memref<32x16xbf16, #tpu.memory_space<vmem>>, vector<32x16xbf16>
    %cst_7 = arith.constant dense<0.000000e+00> : vector<32x128xf32>
    %15 = tpu.matmul %14, %9, %cst_7 {dimension_numbers = #tpu.dot_dimension_numbers<[1], [1], [0], [0], [0, 0, 1, 0], [], []>} : vector<32x16xbf16>, vector<128x16xbf16>, vector<32x128xf32> -> vector<32x128xf32>
    %16 = vector.broadcast %10 : vector<32x1xf32> to vector<32x128xf32>
    %17 = arith.addf %15, %16 : vector<32x128xf32>
    %cst_8 = arith.constant 0.00999999977 : f32
    %18 = vector.broadcast %cst_8 : f32 to vector<32x128xf32>
    %19 = arith.mulf %18, %17 : vector<32x128xf32>
    %20 = arith.maximumf %17, %19 : vector<32x128xf32>
    %c0_9 = arith.constant 0 : index
    %c0_10 = arith.constant 0 : index
    %21 = vector.load %arg3[%c0_9, %c0_10] : memref<32x32xbf16, #tpu.memory_space<vmem>>, vector<32x32xbf16>
    %22 = arith.truncf %20 : vector<32x128xf32> to vector<32x128xbf16>
    %cst_11 = arith.constant dense<0.000000e+00> : vector<32x128xf32>
    %23 = tpu.matmul %21, %22, %cst_11 {dimension_numbers = #tpu.dot_dimension_numbers<[1], [0], [0], [1], [0, 0, 1, 1], [], []>} : vector<32x32xbf16>, vector<32x128xbf16>, vector<32x128xf32> -> vector<32x128xf32>
    %24 = arith.addf %23, %13 : vector<32x128xf32>
    %cst_12 = arith.constant 0.00999999977 : f32
    %25 = vector.broadcast %cst_12 : f32 to vector<32x128xf32>
    %26 = arith.mulf %25, %24 : vector<32x128xf32>
    %27 = arith.maximumf %24, %26 : vector<32x128xf32>
    %28 = arith.truncf %27 : vector<32x128xf32> to vector<32x128xbf16>
    %cst_13 = arith.constant dense<0.000000e+00> : vector<32x128xf32>
    %29 = tpu.matmul %21, %28, %cst_13 {dimension_numbers = #tpu.dot_dimension_numbers<[1], [0], [0], [1], [0, 0, 1, 1], [], []>} : vector<32x32xbf16>, vector<32x128xbf16>, vector<32x128xf32> -> vector<32x128xf32>
    %30 = arith.addf %29, %13 : vector<32x128xf32>
    %cst_14 = arith.constant 0.00999999977 : f32
    %31 = vector.broadcast %cst_14 : f32 to vector<32x128xf32>
    %32 = arith.mulf %31, %30 : vector<32x128xf32>
    %33 = arith.maximumf %30, %32 : vector<32x128xf32>
    %34 = arith.truncf %33 : vector<32x128xf32> to vector<32x128xbf16>
    %cst_15 = arith.constant dense<0.000000e+00> : vector<32x128xf32>
    %35 = tpu.matmul %21, %34, %cst_15 {dimension_numbers = #tpu.dot_dimension_numbers<[1], [0], [0], [1], [0, 0, 1, 1], [], []>} : vector<32x32xbf16>, vector<32x128xbf16>, vector<32x128xf32> -> vector<32x128xf32>
    %36 = arith.addf %35, %13 : vector<32x128xf32>
    %cst_16 = arith.constant 0.00999999977 : f32
    %37 = vector.broadcast %cst_16 : f32 to vector<32x128xf32>
    %38 = arith.mulf %37, %36 : vector<32x128xf32>
    %39 = arith.maximumf %36, %38 : vector<32x128xf32>
    %c0_17 = arith.constant 0 : index
    %c0_18 = arith.constant 0 : index
    %40 = vector.load %arg4[%c0_17, %c0_18] : memref<16x32xbf16, #tpu.memory_space<vmem>>, vector<16x32xbf16>
    %41 = arith.truncf %39 : vector<32x128xf32> to vector<32x128xbf16>
    %cst_19 = arith.constant dense<0.000000e+00> : vector<16x128xf32>
    %42 = tpu.matmul %40, %41, %cst_19 {dimension_numbers = #tpu.dot_dimension_numbers<[1], [0], [0], [1], [0, 0, 1, 1], [], []>} : vector<16x32xbf16>, vector<32x128xbf16>, vector<16x128xf32> -> vector<16x128xf32>
    %c0_20 = arith.constant 0 : index
    %c0_21 = arith.constant 0 : index
    %43 = vector.load %arg6[%c0_20, %c0_21] : memref<16x1xf32, #tpu.memory_space<vmem>>, vector<16x1xf32>
    %44 = vector.broadcast %43 : vector<16x1xf32> to vector<16x128xf32>
    %45 = arith.addf %42, %44 : vector<16x128xf32>
    %cst_22 = arith.constant dense<0xFF800000> : vector<128xf32>
    %46 = vector.multi_reduction <maximumf>, %45, %cst_22 [0] : vector<16x128xf32> to vector<128xf32>
    %47 = vector.shape_cast %46 : vector<128xf32> to vector<1x128xf32>
    %48 = vector.broadcast %47 : vector<1x128xf32> to vector<16x128xf32>
    %49 = arith.subf %45, %48 : vector<16x128xf32>
    %50 = math.exp %49 : vector<16x128xf32>
    %cst_23 = arith.constant dense<0.000000e+00> : vector<128xf32>
    %51 = vector.multi_reduction <add>, %50, %cst_23 [0] : vector<16x128xf32> to vector<128xf32>
    %52 = vector.shape_cast %51 : vector<128xf32> to vector<1x128xf32>
    %cst_24 = arith.constant 1.000000e+00 : f32
    %53 = vector.broadcast %cst_24 : f32 to vector<1x128xf32>
    %54 = arith.divf %53, %52 : vector<1x128xf32>
    %55 = vector.broadcast %54 : vector<1x128xf32> to vector<16x128xf32>
    %56 = arith.mulf %50, %55 : vector<16x128xf32>
    %c0_25 = arith.constant 0 : index
    %c0_26 = arith.constant 0 : index
    %57 = vector.load %arg7[%c0_25, %c0_26] : memref<16x128xf32, #tpu.memory_space<vmem>>, vector<16x128xf32>
    tpu.vector_store %arg7[%c0_25, %c0_26], %56 {strides = array<i32>} : memref<16x128xf32, #tpu.memory_space<vmem>>, vector<16x128xf32>,
    return
  }
  func.func @transform_0(%arg0: i32) -> (i32, i32) {
    %c0_i32 = arith.constant 0 : i32
    %c0_i32_0 = arith.constant 0 : i32
    return %arg0, %c0_i32 : i32, i32
  }
  func.func @transform_1(%arg0: i32) -> (i32, i32) {
    %c0_i32 = arith.constant 0 : i32
    %c0_i32_0 = arith.constant 0 : i32
    %c0_i32_1 = arith.constant 0 : i32
    return %c0_i32, %c0_i32_0 : i32, i32
  }
  func.func @transform_2(%arg0: i32) -> (i32, i32) {
    %c0_i32 = arith.constant 0 : i32
    %c0_i32_0 = arith.constant 0 : i32
    %c0_i32_1 = arith.constant 0 : i32
    return %c0_i32, %c0_i32_0 : i32, i32
  }
  func.func @transform_3(%arg0: i32) -> (i32, i32) {
    %c0_i32 = arith.constant 0 : i32
    %c0_i32_0 = arith.constant 0 : i32
    %c0_i32_1 = arith.constant 0 : i32
    return %c0_i32, %c0_i32_0 : i32, i32
  }
  func.func @transform_4(%arg0: i32) -> (i32, i32) {
    %c0_i32 = arith.constant 0 : i32
    %c0_i32_0 = arith.constant 0 : i32
    %c0_i32_1 = arith.constant 0 : i32
    return %c0_i32, %c0_i32_0 : i32, i32
  }
  func.func @transform_5(%arg0: i32) -> (i32, i32) {
    %c0_i32 = arith.constant 0 : i32
    %c0_i32_0 = arith.constant 0 : i32
    %c0_i32_1 = arith.constant 0 : i32
    return %c0_i32, %c0_i32_0 : i32, i32
  }
  func.func @transform_6(%arg0: i32) -> (i32, i32) {
    %c0_i32 = arith.constant 0 : i32
    %c0_i32_0 = arith.constant 0 : i32
    return %c0_i32, %arg0 : i32, i32
  }
}

</mosaic_0001>

<bundles_post_ra>
// kernel: mlp_forward.1
= control target key start
LH: loop header
LB: loop body
LE: loop exit
PB: predicated region body
PF: predicated region fallthrough
CT: control target
= control target key end

     0   :  { %vm56_vm0 = vcmask 130048   ;;  %v745_v49 = vmov 0   ;;  %vm318_vm1 = vcmask 261120   ;;  %vm748_vm2 = vmmov 0   ;;  %s1021_s0 = inlined_call_operand.vmem [shape: f32[8,16], index: 0, kind: input, shape index: {}]   ;;  %s1022_s1 = inlined_call_operand.vmem [shape: bf16[32,16], index: 1, kind: input, shape index: {}]   ;;  %s1023_s4 = inlined_call_operand.vmem [shape: f32[32,2], index: 4, kind: input, shape index: {}]   ;;  %s1024_s5 = inlined_call_operand.vmem [shape: f32[16,1], index: 5, kind: input, shape index: {}]   ;;  %s1025_s2 = inlined_call_operand.vmem [shape: bf16[32,32], index: 2, kind: input, shape index: {}]   ;;  %s1026_s3 = inlined_call_operand.vmem [shape: bf16[16,32], index: 3, kind: input, shape index: {}]   ;;  %s1027_s6 = inlined_call_operand.vmem [shape: f32[16,8], index: 6, kind: output, shape index: {}]  }
   0x1   :  { %v787_v0 = vld [vmem:[%s1021_s0] sm:$0xff]  ;;  %v792_v1 = vld [vmem:[%s1021_s0 + $0x10] sm:$0xff]  ;;  %v797_v2 = vld [vmem:[%s1021_s0 + $0x8] sm:$0xff]  ;;  %699 = vset.pattern.permute.xlu1 %v745_v49  ;;  %698 = vset.pattern.permute.xlu0 %v745_v49 }
   0x2   :  { %v40_v3 = vmul.f32 %v787_v0, %v787_v0  ;;  %v42_v4 = vmul.f32 %v792_v1, %v792_v1  ;;  %v41_v5 = vmul.f32 %v797_v2, %v797_v2  ;;  %v808_v6 = vld [vmem:[%s1021_s0 + $0x18] sm:$0xff]  ;;  %v815_v8 = vld [vmem:[%s1021_s0 + $0x28] sm:$0xff]  ;;  %v820_v9 = vld [vmem:[%s1021_s0 + $0x20] sm:$0xff] }
   0x3   :  { %v43_v7 = vmul.f32 %v808_v6, %v808_v6  ;;  %v45_v14 = vmul.f32 %v815_v8, %v815_v8  ;;  %v44_v15 = vmul.f32 %v820_v9, %v820_v9  ;;  %v833_v16 = vld [vmem:[%s1021_s0 + $0x38] sm:$0xff]  ;;  %v838_v17 = vld [vmem:[%s1021_s0 + $0x30] sm:$0xff]  ;;  %v849_v22 = vld [vmem:[%s1021_s0 + $0x48] sm:$0xff] }
   0x4   :  { %v57_v10 = vsel %vm56_vm0, %v40_v3, 0.0  ;;  %v63_v11 = vsel %vm56_vm0, %v42_v4, 0.0  ;;  %v60_v12 = vsel %vm56_vm0, %v41_v5, 0.0  ;;  %v47_v20 = vmul.f32 %v833_v16, %v833_v16  ;;  %v854_v23 = vld [vmem:[%s1021_s0 + $0x40] sm:$0xff]  ;;  %v865_v28 = vld [vmem:[%s1021_s0 + $0x58] sm:$0xff]  ;;  %v870_v29 = vld [vmem:[%s1021_s0 + $0x50] sm:$0xff] }
   0x5   :  { %58 = vadd.xlane.f32.xlu0 %v57_v10  ;;  %64 = vadd.xlane.f32.xlu1 %v63_v11  ;;  %v66_v13 = vsel %vm56_vm0, %v43_v7, 0.0  ;;  %v72_v18 = vsel %vm56_vm0, %v45_v14, 0.0  ;;  %v69_v19 = vsel %vm56_vm0, %v44_v15, 0.0  ;;  %v46_v21 = vmul.f32 %v838_v17, %v838_v17  ;;  %v881_v34 = vld [vmem:[%s1021_s0 + $0x68] sm:$0xff]  ;;  %v886_v35 = vld [vmem:[%s1021_s0 + $0x60] sm:$0xff]  ;;  %v897_v40 = vld [vmem:[%s1021_s0 + $0x78] sm:$0xff] }
   0x6   :  { %v78_v24 = vsel %vm56_vm0, %v47_v20, 0.0  ;;  %v49_v26 = vmul.f32 %v849_v22, %v849_v22  ;;  %v48_v27 = vmul.f32 %v854_v23, %v854_v23  ;;  %v51_v32 = vmul.f32 %v865_v28, %v865_v28  ;;  %v902_v41 = vld [vmem:[%s1021_s0 + $0x70] sm:$0xff]  ;;  %v702_v48 = vld [vmem:[%s1022_s1] sm:$0xff]   ;;  %v920_v50 = vld [vmem:[%s1023_s4 + $0x8] sm:$0xff] }
   0x7   :  { %v75_v25 = vsel %vm56_vm0, %v46_v21, 0.0  ;;  %v50_v33 = vmul.f32 %v870_v29, %v870_v29  ;;  %v53_v38 = vmul.f32 %v881_v34, %v881_v34  ;;  %v52_v39 = vmul.f32 %v886_v35, %v886_v35  ;;  %650 = vmatprep.mubr.msk.bf16.mxu0 %vm56_vm0, %v702_v48  ;;  %v927_v51 = vld [vmem:[%s1023_s4] sm:$0xff]  ;;  %v932_v52 = vld [vmem:[%s1023_s4 + $0x10] sm:$0xff]  ;;  %v505_v53 = vld [vmem:[%s1024_s5 + $0x8] sm:$0xff] }
   0x8   :  { %v84_v30 = vsel %vm56_vm0, %v49_v26, 0.0  ;;  %v81_v31 = vsel %vm56_vm0, %v48_v27, 0.0  ;;  %v90_v36 = vsel %vm56_vm0, %v51_v32, 0.0  ;;  %v55_v44 = vmul.f32 %v897_v40, %v897_v40  ;;  %v942_v54 = vld [vmem:[%s1023_s4 + $0x18] sm:$0xff] }
   0x9   :  { %61 = vadd.xlane.f32.xlu0 %v60_v12  ;;  %67 = vadd.xlane.f32.xlu1 %v66_v13  ;;  %v87_v37 = vsel %vm56_vm0, %v50_v33, 0.0  ;;  %v96_v42 = vsel %vm56_vm0, %v53_v38, 0.0  ;;  %v93_v43 = vsel %vm56_vm0, %v52_v39, 0.0  ;;  %v54_v45 = vmul.f32 %v902_v41, %v902_v41 }
   0xa   :  { %v102_v46 = vsel %vm56_vm0, %v55_v44, 0.0 }
   0xb   :  { %v99_v47 = vsel %vm56_vm0, %v54_v45, 0.0 }
   0xd   :  { %73 = vadd.xlane.f32.xlu1 %v72_v18  ;;  %70 = vadd.xlane.f32.xlu0 %v69_v19 }
  0x11   :  { %79 = vadd.xlane.f32.xlu1 %v78_v24  ;;  %76 = vadd.xlane.f32.xlu0 %v75_v25 }
  0x15   :  { %85 = vadd.xlane.f32.xlu1 %v84_v30  ;;  %82 = vadd.xlane.f32.xlu0 %v81_v31 }
  0x19   :  { %91 = vadd.xlane.f32.xlu1 %v90_v36  ;;  %88 = vadd.xlane.f32.xlu0 %v87_v37 }
  0x1d   :  { %97 = vadd.xlane.f32.xlu1 %v96_v42  ;;  %94 = vadd.xlane.f32.xlu0 %v93_v43 }
  0x21   :  { %103 = vadd.xlane.f32.xlu1 %v102_v46  ;;  %100 = vadd.xlane.f32.xlu0 %v99_v47 }
  0x32   :  { %194 = vperm.xlu1 %699, %v920_v50  }
  0x36   :  { %198 = vperm.xlu1 %699, %v932_v52  }
  0x37   :  { %190 = vperm.xlu0 %698, %v927_v51  }
  0x3a   :  { %202 = vperm.xlu1 %699, %v942_v54  }
  0x3b   :  { %513 = vperm.xlu0 %698, %v505_v53  }
  0x92   :  { %v59_v55 = vpop.xlane.xlu0 %58  ;;  %v65_v56 = vpop.xlane.xlu1 %64 }
  0x93   :  { %v105_v57 = vmax.f32 %v59_v55, 1e-24  ;;  %v107_v58 = vmax.f32 %v65_v56, 1e-24 }
  0x95   :  { %707 = vrsqrt.f32 %v107_v58 }
  0x96   :  { %v62_v59 = vpop.xlane.xlu0 %61  ;;  %v68_v60 = vpop.xlane.xlu1 %67  ;;  %709 = vrsqrt.f32 %v105_v57 }
  0x97   :  { %v106_v61 = vmax.f32 %v62_v59, 1e-24  ;;  %v108_v62 = vmax.f32 %v68_v60, 1e-24 }
  0x99   :  { %711 = vrsqrt.f32 %v106_v61 }
  0x9a   :  { %713 = vrsqrt.f32 %v108_v62  ;;  %v74_v63 = vpop.xlane.xlu1 %73  ;;  %v71_v3 = vpop.xlane.xlu0 %70 }
  0x9b   :  { %v110_v4 = vmax.f32 %v74_v63, 1e-24  ;;  %v109_v5 = vmax.f32 %v71_v3, 1e-24 }
  0x9d   :  { %715 = vrsqrt.f32 %v110_v4 }
  0x9e   :  { %717 = vrsqrt.f32 %v109_v5  ;;  %v80_v7 = vpop.xlane.xlu1 %79  ;;  %v77_v10 = vpop.xlane.xlu0 %76 }
  0x9f   :  { %v708_v11 = vpop.eup %707  ;;  %v112_v12 = vmax.f32 %v80_v7, 1e-24  ;;  %v111_v14 = vmax.f32 %v77_v10, 1e-24 }
  0xa0   :  { %v710_v13 = vpop.eup %709  ;;  %v139_v18 = vmul.f32 %v708_v11, %v792_v1 }
  0xa1   :  { %v137_v20 = vmul.f32 %v710_v13, %v787_v0  ;;  %719 = vrsqrt.f32 %v112_v12 }
  0xa2   :  { %721 = vrsqrt.f32 %v111_v14  ;;  %v86_v25 = vpop.xlane.xlu1 %85  ;;  %v83_v27 = vpop.xlane.xlu0 %82 }
  0xa3   :  { %v712_v15 = vpop.eup %711  ;;  %v114_v1 = vmax.f32 %v86_v25, 1e-24  ;;  %v113_v36 = vmax.f32 %v83_v27, 1e-24 }
  0xa4   :  { %v714_v19 = vpop.eup %713  ;;  %v138_v21 = vmul.f32 %v712_v15, %v797_v2 }
  0xa5   :  { %v140_v24 = vmul.f32 %v714_v19, %v808_v6  ;;  %723 = vrsqrt.f32 %v114_v1 }
  0xa6   :  { %v153_v26 = vpack.c.bf16 %v138_v21, %v137_v20  ;;  %725 = vrsqrt.f32 %v113_v36  ;;  %v92_v6 = vpop.xlane.xlu1 %91  ;;  %v89_v39 = vpop.xlane.xlu0 %88 }
  0xa7   :  { %v716_v30 = vpop.eup %715  ;;  %v154_v31 = vpack.c.bf16 %v140_v24, %v139_v18  ;;  %v116_v44 = vmax.f32 %v92_v6, 1e-24  ;;  %v115_v45 = vmax.f32 %v89_v39, 1e-24 }
  0xa8   :  { %v718_v32 = vpop.eup %717  ;;  %686 = vmatprep.subr.msk.bf16.mxu0 %vm56_vm0, %v153_v26  ;;  %v222_v33 = vsel %vm56_vm0, %v153_v26, 0  ;;  %v142_v2 = vmul.f32 %v716_v30, %v815_v8 }
  0xa9   :  { %635 = vmatpush3.bf16.xpose.msra.mxu0 %v222_v33  ;;  %v141_v0 = vmul.f32 %v718_v32, %v820_v9  ;;  %v225_v43 = vsel %vm56_vm0, %v154_v31, 0  ;;  %727 = vrsqrt.f32 %v116_v44  ;;  %v705_v44 = vld [vmem:[%s1025_s2 + $0x8] sm:$0xff]  }
  0xaa   :  { %687 = vmatprep.subr.msk.bf16.mxu0 %vm56_vm0, %v154_v31  ;;  %729 = vrsqrt.f32 %v115_v45  ;;  %v98_v8 = vpop.xlane.xlu1 %97  ;;  %v95_v55 = vpop.xlane.xlu0 %94 }
  0xab   :  { %v720_v37 = vpop.eup %719  ;;  %v155_v38 = vpack.c.bf16 %v142_v2, %v141_v0  ;;  %v118_v57 = vmax.f32 %v98_v8, 1e-24  ;;  %v117_v58 = vmax.f32 %v95_v55, 1e-24 }
  0xac   :  { %v722_v42 = vpop.eup %721  ;;  %v144_v9 = vmul.f32 %v720_v37, %v833_v16 }
  0xad   :  { %v143_v46 = vmul.f32 %v722_v42, %v838_v17  ;;  %v228_v48 = vsel %vm56_vm0, %v155_v38, 0  ;;  %731 = vrsqrt.f32 %v118_v57 }
  0xae   :  { %733 = vrsqrt.f32 %v117_v58  ;;  %v104_v16 = vpop.xlane.xlu1 %103  ;;  %v101_v63 = vpop.xlane.xlu0 %100 }
  0xaf   :  { %v724_v47 = vpop.eup %723  ;;  %v156_v53 = vpack.c.bf16 %v144_v9, %v143_v46  ;;  %v120_v4 = vmax.f32 %v104_v16, 1e-24  ;;  %v119_v5 = vmax.f32 %v101_v63, 1e-24 }
  0xb0   :  { %v726_v56 = vpop.eup %725  ;;  %v146_v17 = vmul.f32 %v724_v47, %v849_v22 }
  0xb1   :  { %637 = vmatpush3.bf16.xpose.msra.mxu0 %v225_v43  ;;  %v145_v59 = vmul.f32 %v726_v56, %v854_v23  ;;  %v231_v61 = vsel %vm56_vm0, %v156_v53, 0  ;;  %735 = vrsqrt.f32 %v120_v4 }
  0xb2   :  { %688 = vmatprep.subr.msk.bf16.mxu0 %vm56_vm0, %v155_v38  ;;  %737 = vrsqrt.f32 %v119_v5  ;;  %v195_v25 = vpop.permute.xlu1 %194 }
  0xb3   :  { %v728_v60 = vpop.eup %727  ;;  %v157_v62 = vpack.c.bf16 %v146_v17, %v145_v59 }
  0xb4   :  { %v730_v3 = vpop.eup %729  ;;  %v148_v23 = vmul.f32 %v728_v60, %v865_v28 }
  0xb5   :  { %v147_v7 = vmul.f32 %v730_v3, %v870_v29  ;;  %v234_v10 = vsel %vm56_vm0, %v157_v62, 0 }
  0xb6   :  { %v199_v26 = vpop.permute.xlu1 %198  ;;  %v191_v30 = vpop.permute.xlu0 %190 }
  0xb7   :  { %v732_v22 = vpop.eup %731  ;;  %v158_v11 = vpack.c.bf16 %v148_v23, %v147_v7 }
  0xb8   :  { %v734_v12 = vpop.eup %733  ;;  %v150_v14 = vmul.f32 %v732_v22, %v881_v34 }
  0xb9   :  { %639 = vmatpush3.bf16.xpose.msra.mxu0 %v228_v48  ;;  %v149_v13 = vmul.f32 %v734_v12, %v886_v35  ;;  %v237_v18 = vsel %vm56_vm0, %v158_v11, 0  ;;  %v703_v35 = vld [vmem:[%s1022_s1 + $0x8] sm:$0xff]  }
  0xba   :  { %689 = vmatprep.subr.msk.bf16.mxu0 %vm56_vm0, %v156_v53  ;;  %v203_v33 = vpop.permute.xlu1 %202 }
  0xbb   :  { %v736_v15 = vpop.eup %735  ;;  %v159_v29 = vpack.c.bf16 %v150_v14, %v149_v13 }
  0xbc   :  { %v738_v19 = vpop.eup %737  ;;  %v152_v20 = vmul.f32 %v736_v15, %v897_v40  ;;  %v746_v40 = vmov 1  }
  0xbd   :  { %v151_v28 = vmul.f32 %v738_v19, %v902_v41  ;;  %v240_v21 = vsel %vm56_vm0, %v159_v29, 0  ;;  %v984_v41 = vld [vmem:[%s1025_s2] sm:$0xff]   ;;  %700 = vset.pattern.permute.xlu1 %v746_v40 }
  0xbe   :  { %658 = vmatprep.mubr.msk.bf16.mxu1 %vm318_vm1, %v984_v41  ;;  %167 = vperm.xlu1 %700, %v927_v51  }
  0xbf   :  { %v160_v24 = vpack.c.bf16 %v152_v20, %v151_v28 }
  0xc1   :  { %641 = vmatpush3.bf16.xpose.msra.mxu0 %v231_v61  ;;  %v243_v34 = vsel %vm56_vm0, %v160_v24, 0 }
  0xc2   :  { %690 = vmatprep.subr.msk.bf16.mxu0 %vm56_vm0, %v157_v62  ;;  %172 = vperm.xlu1 %700, %v920_v50  }
  0xc6   :  { %177 = vperm.xlu1 %700, %v932_v52  }
  0xc9   :  { %643 = vmatpush3.bf16.xpose.msra.mxu0 %v234_v10 }
  0xca   :  { %691 = vmatprep.subr.msk.bf16.mxu0 %vm56_vm0, %v158_v11  ;;  %182 = vperm.xlu1 %700, %v942_v54  }
  0xce   :  { %701 = vset.pattern.permute.xlu1 %v745_v49 }
  0xd1   :  { %645 = vmatpush3.bf16.xpose.msra.mxu0 %v237_v18 }
  0xd2   :  { %692 = vmatprep.subr.msk.bf16.mxu0 %vm56_vm0, %v159_v29 }
  0xd9   :  { %647 = vmatpush3.bf16.xpose.msra.mxu0 %v240_v21 }
  0xda   :  { %693 = vmatprep.subr.msk.bf16.mxu0 %vm56_vm0, %v160_v24 }
  0xe1   :  { %649 = vmatpush3.bf16.xpose.msra.mxu0 %v243_v34 }
  0xe8   :  { %651 = vmatmul.mubr.msk.bf16.vlgmr.msra.gmra.mrb[0].mxu0 %vm56_vm0, %v703_v35 }
 0x13d   :  { %v168_v45 = vpop.permute.xlu1 %167 }
 0x141   :  { %v999_v46 = vpop.permute.xlu1 %172 }
 0x145   :  { %v178_v9 = vpop.permute.xlu1 %177 }
 0x149   :  { %v183_v53 = vpop.permute.xlu1 %182 }
 0x1bb   :  { %v652_v27 = vpop.f32.mrb[0].mxu0 }
 0x1bc   :  { %v288_v31 = vadd.f32 %v652_v27, %v199_v26  ;;  %v279_v32 = vpop.f32.mrb[1].mxu0 }
 0x1bd   :  { %v280_v1 = vadd.f32 %v279_v32, %v191_v30  ;;  %v653_v36 = vpop.f32.mrb[2].mxu0 }
 0x1be   :  { %v296_v0 = vmul.f32 0.01, %v288_v31  ;;  %v291_v2 = vadd.f32 %v653_v36, %v203_v33  ;;  %v282_v51 = vpop.f32.mrb[3].mxu0 }
 0x1bf   :  { %v294_v6 = vmul.f32 0.01, %v280_v1  ;;  %v283_v50 = vadd.f32 %v282_v51, %v195_v25  ;;  %v504_v25 = vld [vmem:[%s1024_s5] sm:$0xff] }
 0x1c0   :  { %v297_v37 = vmul.f32 0.01, %v291_v2  ;;  %v300_v38 = vmax.f32 %v288_v31, %v296_v0  ;;  %508 = vperm.xlu1 %701, %v504_v25  }
 0x1c1   :  { %v295_v52 = vmul.f32 0.01, %v283_v50  ;;  %v298_v39 = vmax.f32 %v280_v1, %v294_v6 }
 0x1c2   :  { %v301_v54 = vmax.f32 %v291_v2, %v297_v37 }
 0x1c3   :  { %v299_v49 = vmax.f32 %v283_v50, %v295_v52 }
 0x1c4   :  { %v307_v42 = vpack.c.bf16 %v301_v54, %v300_v38 }
 0x1c5   :  { %v306_v43 = vpack.c.bf16 %v299_v49, %v298_v39  ;;  %v706_v49 = vld [vmem:[%s1026_s3] sm:$0xff]  }
 0x1c7   :  { %654 = vmatprep.subr.bf16.mxu1 %v306_v43 }
 0x1c8   :  { %655 = vmatpush3.bf16.msra.mxu1 %v306_v43 }
 0x1c9   :  { %656 = vmatprep.subr.bf16.mxu1 %v307_v42 }
 0x1cc   :  { %657 = vmatpush3.bf16.msra.mxu1 %v307_v42 }
 0x1cf   :  { %659 = vmatmul.mubr.msk.bf16.vlgmr.msra.gmra.mrb[0].mxu1 %vm318_vm1, %v705_v44 }
 0x1d0   :  { %666 = vmatprep.mubr.msk.bf16.mxu1 %vm318_vm1, %v984_v41 }
 0x23f   :  { %v509_v43 = vpop.permute.xlu1 %508 }
 0x2a2   :  { %v660_v8 = vpop.f32.mrb[0].mxu1 }
 0x2a3   :  { %v368_v47 = vadd.f32 %v660_v8, %v178_v9  ;;  %v359_v48 = vpop.f32.mrb[1].mxu1 }
 0x2a4   :  { %v360_v55 = vadd.f32 %v359_v48, %v168_v45  ;;  %v661_v56 = vpop.f32.mrb[2].mxu1 }
 0x2a5   :  { %v376_v57 = vmul.f32 0.01, %v368_v47  ;;  %v371_v58 = vadd.f32 %v661_v56, %v183_v53  ;;  %v362_v59 = vpop.f32.mrb[3].mxu1 }
 0x2a6   :  { %v374_v17 = vmul.f32 0.01, %v360_v55  ;;  %v363_v16 = vadd.f32 %v362_v59, %v999_v46 }
 0x2a7   :  { %v377_v60 = vmul.f32 0.01, %v371_v58  ;;  %v380_v62 = vmax.f32 %v368_v47, %v376_v57 }
 0x2a8   :  { %v375_v61 = vmul.f32 0.01, %v363_v16  ;;  %v378_v3 = vmax.f32 %v360_v55, %v374_v17 }
 0x2a9   :  { %v381_v63 = vmax.f32 %v371_v58, %v377_v60 }
 0x2aa   :  { %v379_v4 = vmax.f32 %v363_v16, %v375_v61 }
 0x2ab   :  { %v383_v5 = vpack.c.bf16 %v381_v63, %v380_v62 }
 0x2ac   :  { %v382_v7 = vpack.c.bf16 %v379_v4, %v378_v3 }
 0x2ae   :  { %662 = vmatprep.subr.bf16.mxu1 %v382_v7 }
 0x2af   :  { %663 = vmatpush3.bf16.msra.mxu1 %v382_v7 }
 0x2b0   :  { %664 = vmatprep.subr.bf16.mxu1 %v383_v5 }
 0x2b3   :  { %665 = vmatpush3.bf16.msra.mxu1 %v383_v5 }
 0x2b6   :  { %667 = vmatmul.mubr.msk.bf16.vlgmr.msra.gmra.mrb[4].mxu1 %vm318_vm1, %v705_v44 }
 0x2b7   :  { %674 = vmatprep.mubr.msk.bf16.mxu1 %vm318_vm1, %v984_v41  ;;  %v747_v41 = vmov 0.0  }
 0x389   :  { %v668_v23 = vpop.f32.mrb[4].mxu1 }
 0x38a   :  { %v427_v22 = vadd.f32 %v668_v23, %v178_v9  ;;  %v418_v10 = vpop.f32.mrb[5].mxu1 }
 0x38b   :  { %v419_v11 = vadd.f32 %v418_v10, %v168_v45  ;;  %v669_v12 = vpop.f32.mrb[6].mxu1 }
 0x38c   :  { %v435_v13 = vmul.f32 0.01, %v427_v22  ;;  %v430_v14 = vadd.f32 %v669_v12, %v183_v53  ;;  %v421_v15 = vpop.f32.mrb[7].mxu1 }
 0x38d   :  { %v433_v18 = vmul.f32 0.01, %v419_v11  ;;  %v422_v29 = vadd.f32 %v421_v15, %v999_v46 }
 0x38e   :  { %v436_v19 = vmul.f32 0.01, %v430_v14  ;;  %v439_v20 = vmax.f32 %v427_v22, %v435_v13 }
 0x38f   :  { %v434_v28 = vmul.f32 0.01, %v422_v29  ;;  %v437_v24 = vmax.f32 %v419_v11, %v433_v18 }
 0x390   :  { %v440_v21 = vmax.f32 %v430_v14, %v436_v19 }
 0x391   :  { %v438_v34 = vmax.f32 %v422_v29, %v434_v28 }
 0x392   :  { %v442_v35 = vpack.c.bf16 %v440_v21, %v439_v20 }
 0x393   :  { %v441_v40 = vpack.c.bf16 %v438_v34, %v437_v24 }
 0x395   :  { %670 = vmatprep.subr.bf16.mxu1 %v441_v40 }
 0x396   :  { %671 = vmatpush3.bf16.msra.mxu1 %v441_v40 }
 0x397   :  { %672 = vmatprep.subr.bf16.mxu1 %v442_v35 }
 0x39a   :  { %673 = vmatpush3.bf16.msra.mxu1 %v442_v35 }
 0x39b   :  { %678 = vmatprep.subr.bf16.mxu1 %v747_v41 }
 0x39d   :  { %675 = vmatmul.mubr.msk.bf16.vlgmr.msra.gmra.mrb[8].mxu1 %vm318_vm1, %v705_v44 }
 0x39e   :  { %682 = vmatprep.mubr.msk.bf16.mxu1 %vm748_vm2, %v747_v41 }
 0x470   :  { %v676_v26 = vpop.f32.mrb[8].mxu1 }
 0x471   :  { %v486_v27 = vadd.f32 %v676_v26, %v178_v9  ;;  %v477_v30 = vpop.f32.mrb[9].mxu1 }
 0x472   :  { %v478_v31 = vadd.f32 %v477_v30, %v168_v45  ;;  %v677_v32 = vpop.f32.mrb[10].mxu1  ;;  %v514_v45 = vpop.permute.xlu0 %513 }
 0x473   :  { %v494_v33 = vmul.f32 0.01, %v486_v27  ;;  %v489_v1 = vadd.f32 %v677_v32, %v183_v53  ;;  %v480_v36 = vpop.f32.mrb[11].mxu1 }
 0x474   :  { %v492_v0 = vmul.f32 0.01, %v478_v31  ;;  %v481_v2 = vadd.f32 %v480_v36, %v999_v46 }
 0x475   :  { %v495_v51 = vmul.f32 0.01, %v489_v1  ;;  %v498_v50 = vmax.f32 %v486_v27, %v494_v33 }
 0x476   :  { %v493_v6 = vmul.f32 0.01, %v481_v2  ;;  %v496_v52 = vmax.f32 %v478_v31, %v492_v0 }
 0x477   :  { %v499_v37 = vmax.f32 %v489_v1, %v495_v51 }
 0x478   :  { %v497_v38 = vmax.f32 %v481_v2, %v493_v6 }
 0x479   :  { %v503_v54 = vpack.c.bf16 %v499_v37, %v498_v50 }
 0x47a   :  { %v502_v39 = vpack.c.bf16 %v497_v38, %v496_v52 }
 0x47c   :  { %679 = vmatpush3.bf16.msra.mxu1 %v502_v39 }
 0x47d   :  { %680 = vmatprep.subr.bf16.mxu1 %v747_v41 }
 0x480   :  { %681 = vmatpush3.bf16.msra.mxu1 %v503_v54 }
 0x483   :  { %683 = vmatmul.mubr.msk.bf16.vlgmr.msra.gmra.mrb[12].mxu1 %vm318_vm1, %v706_v49 }
 0x556   :  { %v558_v42 = vpop.f32.mrb[12].mxu1 }
 0x557   :  { %v684_v44 = vpop.f32.mrb[13].mxu1  ;;  %v559_v9 = vadd.f32 %v558_v42, %v509_v43 }
 0x558   :  { %v561_v46 = vpop.f32.mrb[14].mxu1 }
 0x559   :  { %v562_v8 = vadd.f32 %v561_v46, %v514_v45  ;;  %v685_v47 = vpop.f32.mrb[15].mxu1 }
 0x55b   :  { %v565_v48 = vmax.f32 %v559_v9, %v562_v8 }
 0x55d   :  { %v566_v53 = vrot.slane %v565_v48, 4 }
 0x55f   :  { %v567_v55 = vmax.f32 %v565_v48, %v566_v53 }
 0x561   :  { %v568_v56 = vrot.slane %v567_v55, 2 }
 0x563   :  { %v569_v57 = vmax.f32 %v567_v55, %v568_v56 }
 0x565   :  { %v570_v58 = vrot.slane %v569_v57, 1 }
 0x567   :  { %v571_v59 = vmax.f32 %v569_v57, %v570_v58 }
 0x569   :  { %v572_v17 = vsub.f32 %v559_v9, %v571_v59  ;;  %v573_v16 = vsub.f32 %v562_v8, %v571_v59 }
 0x56b   :  { %v574_v60 = vmul.f32 1.442695, %v572_v17  ;;  %v576_v61 = vmul.f32 1.442695, %v573_v16 }
 0x56d   :  { %739 = vpow2.f32 %v574_v60 }
 0x56e   :  { %741 = vpow2.f32 %v576_v61 }
 0x577   :  { %v740_v62 = vpop.eup %739 }
 0x578   :  { %v742_v63 = vpop.eup %741 }
 0x579   :  { %v578_v3 = vadd.f32 %v742_v63, %v740_v62 }
 0x57b   :  { %v579_v4 = vrot.slane %v578_v3, 4 }
 0x57d   :  { %v580_v5 = vadd.f32 %v579_v4, %v578_v3 }
 0x57f   :  { %v581_v7 = vrot.slane %v580_v5, 2 }
 0x581   :  { %v582_v23 = vadd.f32 %v581_v7, %v580_v5 }
 0x583   :  { %v583_v22 = vrot.slane %v582_v23, 1 }
 0x585   :  { %v584_v10 = vadd.f32 %v583_v22, %v582_v23 }
 0x587   :  { %743 = vrcp.f32 %v584_v10 }
 0x591   :  { %v744_v11 = vpop.eup %743 }
 0x592   :  { %v587_v12 = vmul.f32 %v744_v11, %v740_v62  ;;  %v588_v13 = vmul.f32 %v744_v11, %v742_v63 }
 0x594   :  { %589 = vst [vmem:[%s1027_s6] sm:$0xff] %v587_v12  ;;  %590 = vst [vmem:[%s1027_s6 + $0x8] sm:$0xff] %v588_v13 }

</bundles_post_ra>
